<compile_context>
chip_gen: v5e
topology: v5e:2x2
jax: 0.10.0
libtpu: 0.0.40
codegen_flags: <defaults>
</compile_context>

<pallas_src>
import functools

import jax
import jax.numpy as jnp
from jax import lax
from jax.experimental import pallas as pl
from jax.experimental.pallas import tpu as pltpu


def _round_up(v, m):
    return ((v + m - 1) // m) * m


# ----------------------------------------------------------------------------------
# Single-pass kernel: whole problem resident in VMEM (small / medium graphs).
# ----------------------------------------------------------------------------------
def _linear_bn_small_kernel(x_ref, w_ref, bgb_ref, o_ref, *, eps, mxu_dtype):
    x = x_ref[...]
    w = w_ref[...]
    if mxu_dtype is not None:
        x = x.astype(mxu_dtype)
        w = w.astype(mxu_dtype)
    y = jnp.dot(x, w, preferred_element_type=jnp.float32)
    y = y + bgb_ref[0:1, :].astype(jnp.float32)          # bias

    n = y.shape[0]
    mean = jnp.sum(y, axis=0, keepdims=True) * (1.0 / n)
    yc = y - mean
    var = jnp.maximum(jnp.sum(yc * yc, axis=0, keepdims=True) * (1.0 / n), 0.0)
    inv_std = lax.rsqrt(var + eps)
    a = bgb_ref[1:2, :].astype(jnp.float32) * inv_std     # gamma * inv_std
    c = bgb_ref[2:3, :].astype(jnp.float32)               # beta
    o_ref[...] = (yc * a + c).astype(o_ref.dtype)


# ----------------------------------------------------------------------------------
# Tiled two-phase kernel: grid = (phase, row_tile).
# ----------------------------------------------------------------------------------
def _linear_bn_tiled_kernel(x_ref, w_ref, bgb_ref, o_ref,
                            sum_ref, sq_ref, a_ref, c_ref,
                            *, n_rows, tile_rows, eps, mxu_dtype):
    p = pl.program_id(0)
    r = pl.program_id(1)
    last_r = pl.num_programs(1) - 1
    has_partial = (n_rows % tile_rows) != 0               # static python bool

    def compute_y():
        x = x_ref[...]
        w = w_ref[...]
        if mxu_dtype is not None:
            x = x.astype(mxu_dtype)
            w = w.astype(mxu_dtype)
        y = jnp.dot(x, w, preferred_element_type=jnp.float32)
        return y + bgb_ref[0:1, :].astype(jnp.float32)

    # ---------------- phase 0: matmul + per-feature sum / sum-of-squares -------------
    @pl.when(p == 0)
    def _phase0():
        @pl.when(r == 0)
        def _init():
            sum_ref[...] = jnp.zeros_like(sum_ref)
            sq_ref[...] = jnp.zeros_like(sq_ref)

        y = compute_y()

        if has_partial:
            # Only the single boundary tile needs row masking (out-of-bounds rows in the
            # padded boundary block hold undefined data; select to 0 so stats are exact).
            @pl.when(r == last_r)
            def _acc_masked():
                row = r * tile_rows + lax.broadcasted_iota(jnp.int32, y.shape, 0)
                ym = jnp.where(row < n_rows, y, 0.0)
                sum_ref[...] += jnp.sum(ym, axis=0, keepdims=True)
                sq_ref[...] += jnp.sum(ym * ym, axis=0, keepdims=True)

            @pl.when(r != last_r)
            def _acc_full():
                sum_ref[...] += jnp.sum(y, axis=0, keepdims=True)
                sq_ref[...] += jnp.sum(y * y, axis=0, keepdims=True)
        else:
            sum_ref[...] += jnp.sum(y, axis=0, keepdims=True)
            sq_ref[...] += jnp.sum(y * y, axis=0, keepdims=True)

        @pl.when(r == last_r)
        def _finalize():
            cnt = jnp.float32(n_rows)
            mean = sum_ref[...] * (1.0 / cnt)
            var = jnp.maximum(sq_ref[...] * (1.0 / cnt) - mean * mean, 0.0)
            inv_std = lax.rsqrt(var + eps)
            a = bgb_ref[1:2, :].astype(jnp.float32) * inv_std
            a_ref[...] = a
            c_ref[...] = bgb_ref[2:3, :].astype(jnp.float32) - mean * a

    # ---------------- phase 1: recompute y, apply fused affine, write ----------------
    @pl.when(p == 1)
    def _phase1():
        y = compute_y()
        o_ref[...] = (y * a_ref[...] + c_ref[...]).astype(o_ref.dtype)


# ----------------------------------------------------------------------------------
# Wrapper: one Linear -> BatchNorm1d (training-mode) stack.
# ----------------------------------------------------------------------------------
def linear_bn_forward(x, w, b, gamma, beta, *, eps=1e-5, tile_rows=1024,
                      mxu_dtype=jnp.bfloat16,
                      vmem_fastpath_bytes=24 << 20,
                      vmem_limit_bytes=40 << 20):
    n, din = x.shape
    assert w.shape[0] == din, "weight in_dim mismatch"
    dout = w.shape[1]
    out_dtype = x.dtype

    # bias / gamma / beta packed into one small (3, dout) input -> one DMA stream.
    bgb = jnp.stack([b, gamma, beta]).astype(jnp.float32)

    # ---- single-pass fast path: whole problem VMEM-resident (no second x read) ----
    resident_bytes = 4 * (n * din + din * dout + 3 * dout + 3 * n * dout)
    if resident_bytes <= vmem_fastpath_bytes:
        kernel = functools.partial(_linear_bn_small_kernel, eps=eps, mxu_dtype=mxu_dtype)
        return pl.pallas_call(
            kernel,
            out_shape=jax.ShapeDtypeStruct((n, dout), out_dtype),
            in_specs=[pl.BlockSpec(memory_space=pltpu.MemorySpace.VMEM)] * 3,
            out_specs=pl.BlockSpec(memory_space=pltpu.MemorySpace.VMEM),
            compiler_params=pltpu.CompilerParams(
                vmem_limit_bytes=int(vmem_limit_bytes)),
            cost_estimate=pl.CostEstimate(
                flops=2 * n * din * dout,
                transcendentals=dout,
                bytes_accessed=4 * (n * din + din * dout + n * dout)),
        )(x, w, bgb)

    # ---- tiled two-phase path ----
    tile_r = min(_round_up(tile_rows, 8), _round_up(n, 8))
    # keep the double-buffered working set inside the VMEM budget (v7x has 64 MiB total)
    while tile_r > 64 and (
            4 * (2 * tile_r * (din + dout) + 2 * din * dout + 16 * dout)
            > int(0.6 * vmem_limit_bytes)):
        tile_r //= 2
    tile_r = max(_round_up(tile_r, 8), 8)
    num_tiles = (n + tile_r - 1) // tile_r

    kernel = functools.partial(_linear_bn_tiled_kernel, n_rows=n, tile_rows=tile_r,
                               eps=eps, mxu_dtype=mxu_dtype)

    return pl.pallas_call(
        kernel,
        out_shape=jax.ShapeDtypeStruct((n, dout), out_dtype),
        grid_spec=pltpu.PrefetchScalarGridSpec(
            num_scalar_prefetch=0,
            grid=(2, num_tiles),                                  # (phase, row tile)
            in_specs=[
                # x row tile (true din: block last dim == full array dim, no lane padding)
                pl.BlockSpec((tile_r, din), lambda p, r: (r, 0)),
                # W resident across phases / row tiles
                pl.BlockSpec((din, dout), lambda p, r: (0, 0)),
                # bias / gamma / beta resident
                pl.BlockSpec((3, dout), lambda p, r: (0, 0)),
            ],
            # phase 0 keeps the output block index at 0 (no writebacks);
            # phase 1 visits & writes every row tile exactly once.
            out_specs=pl.BlockSpec((tile_r, dout), lambda p, r: (r * p, 0)),
            scratch_shapes=[
                pltpu.VMEM((1, dout), jnp.float32),   # per-feature sum
                pltpu.VMEM((1, dout), jnp.float32),   # per-feature sum of squares
                pltpu.VMEM((1, dout), jnp.float32),   # fused scale a = gamma*inv_std
                pltpu.VMEM((1, dout), jnp.float32),   # fused shift c = beta - mean*a
            ],
        ),
        compiler_params=pltpu.CompilerParams(
            dimension_semantics=("arbitrary", "arbitrary"),
            vmem_limit_bytes=int(vmem_limit_bytes)),
        cost_estimate=pl.CostEstimate(
            flops=2 * 2 * n * din * dout,
            transcendentals=dout,
            bytes_accessed=4 * (2 * n * din + din * dout + n * dout)),
    )(x, w, bgb)


# ----------------------------------------------------------------------------------
# FeatureEncoder module equivalent.
# ----------------------------------------------------------------------------------
class FeatureEncoderPallas:
    """Deterministically-initialized FeatureEncoder (node + edge Linear encoders with BN)."""

    def __init__(self, dim_in_node, dim_in_edge, dim_inner, key, *, mxu_dtype=jnp.bfloat16):
        self.dim_inner = dim_inner
        self.mxu_dtype = mxu_dtype
        dim_edge = dim_inner  # non-PNA branch: cfg.gnn.dim_edge = cfg.gnn.dim_inner
        ks = jax.random.split(key, 8)

        # Node Linear encoder params (dim_in_node -> dim_inner)
        self.node_w = jax.random.normal(ks[0], (dim_in_node, dim_inner), jnp.float32) * 0.1
        self.node_b = jax.random.normal(ks[1], (dim_inner,), jnp.float32) * 0.1
        self.node_gamma = 1.0 + 0.05 * jax.random.normal(ks[2], (dim_inner,), jnp.float32)
        self.node_beta = 0.05 * jax.random.normal(ks[3], (dim_inner,), jnp.float32)

        # Edge Linear encoder params (dim_in_edge -> dim_edge)
        self.edge_w = jax.random.normal(ks[4], (dim_in_edge, dim_edge), jnp.float32) * 0.1
        self.edge_b = jax.random.normal(ks[5], (dim_edge,), jnp.float32) * 0.1
        self.edge_gamma = 1.0 + 0.05 * jax.random.normal(ks[6], (dim_edge,), jnp.float32)
        self.edge_beta = 0.05 * jax.random.normal(ks[7], (dim_edge,), jnp.float32)

    def __call__(self, batch):
        x = linear_bn_forward(batch["x"], self.node_w, self.node_b,
                              self.node_gamma, self.node_beta, mxu_dtype=self.mxu_dtype)
        e = linear_bn_forward(batch["edge_attr"], self.edge_w, self.edge_b,
                              self.edge_gamma, self.edge_beta, mxu_dtype=self.mxu_dtype)
        return {"x": x, "edge_attr": e}


# ----------------------------------------------------------------------------------
# Pure-JAX reference.
# ----------------------------------------------------------------------------------
def _ref_linear_bn(x, w, b, gamma, beta, eps=1e-5):
    y = x @ w + b
    mean = y.mean(axis=0, keepdims=True)
    var = ((y - mean) ** 2).mean(axis=0, keepdims=True)
    return (y - mean) / jnp.sqrt(var + eps) * gamma + beta


if __name__ == "__main__":
    key = jax.random.PRNGKey(0)
    k_x, k_e, k_params, k_x2 = jax.random.split(key, 4)

    N, E = 8, 16                       # num nodes, num edges
    DIN_NODE, DIN_EDGE = 16, 8
    DIM_INNER = 32

    batch = {
        "x": jax.random.normal(k_x, (N, DIN_NODE), jnp.float32),
        "edge_attr": jax.random.normal(k_e, (E, DIN_EDGE), jnp.float32),
    }

    # ---- exact f32 check (single-pass fast path) ----
    enc = FeatureEncoderPallas(DIN_NODE, DIN_EDGE, DIM_INNER, k_params, mxu_dtype=None)
    out = enc(batch)
    jax.block_until_ready(out)

    ref_x = _ref_linear_bn(batch["x"], enc.node_w, enc.node_b, enc.node_gamma, enc.node_beta)
    ref_e = _ref_linear_bn(batch["edge_attr"], enc.edge_w, enc.edge_b,
                           enc.edge_gamma, enc.edge_beta)
    assert out["x"].shape == ref_x.shape and out["edge_attr"].shape == ref_e.shape
    assert jnp.allclose(out["x"], ref_x, atol=1e-4, rtol=1e-4)
    assert jnp.allclose(out["edge_attr"], ref_e, atol=1e-4, rtol=1e-4)

    # ---- default perf config: bf16 MXU operands, f32 accumulation ----
    enc.mxu_dtype = jnp.bfloat16
    out_bf = enc(batch)
    jax.block_until_ready(out_bf)
    assert float(jnp.max(jnp.abs(out_bf["x"] - ref_x))) < 0.15
    assert float(jnp.max(jnp.abs(out_bf["edge_attr"] - ref_e))) < 0.15

    # ---- tiled two-phase path with a non-divisible row count (boundary-tile masking) ----
    N2 = 300
    x2 = jax.random.normal(k_x2, (N2, DIN_NODE), jnp.float32)
    y2 = linear_bn_forward(x2, enc.node_w, enc.node_b, enc.node_gamma, enc.node_beta,
                           mxu_dtype=None, tile_rows=128, vmem_fastpath_bytes=0)
    jax.block_until_ready(y2)
    ref2 = _ref_linear_bn(x2, enc.node_w, enc.node_b, enc.node_gamma, enc.node_beta)
    assert jnp.allclose(y2, ref2, atol=2e-4, rtol=2e-4)

    print("KERNEL_OK")
</pallas_src>

<mosaic_0001>
module attributes {stable_mosaic.version = 11 : i64} {
  func.func @_linear_bn_small_kernel(%arg0: memref<8x16xf32, #tpu.memory_space<vmem>>, %arg1: memref<16x32xf32, #tpu.memory_space<vmem>>, %arg2: memref<3x32xf32, #tpu.memory_space<vmem>>, %arg3: memref<8x32xf32, #tpu.memory_space<vmem>>) attributes {dimension_semantics = [], scalar_prefetch = 0 : i64, scratch_operands = 0 : i64, tpu.core_type = #tpu.core_type<tc>} {
    %c0 = arith.constant 0 : index
    %c0_0 = arith.constant 0 : index
    %0 = vector.load %arg0[%c0, %c0_0] : memref<8x16xf32, #tpu.memory_space<vmem>>, vector<8x16xf32>
    %c0_1 = arith.constant 0 : index
    %c0_2 = arith.constant 0 : index
    %1 = vector.load %arg1[%c0_1, %c0_2] : memref<16x32xf32, #tpu.memory_space<vmem>>, vector<16x32xf32>
    %cst = arith.constant dense<0.000000e+00> : vector<8x32xf32>
    %2 = tpu.matmul %0, %1, %cst {dimension_numbers = #tpu.dot_dimension_numbers<[1], [0], [0], [1], [0, 0, 1, 1], [], []>} : vector<8x16xf32>, vector<16x32xf32>, vector<8x32xf32> -> vector<8x32xf32>
    %c0_3 = arith.constant 0 : index
    %c0_4 = arith.constant 0 : index
    %3 = vector.load %arg2[%c0_3, %c0_4] : memref<3x32xf32, #tpu.memory_space<vmem>>, vector<1x32xf32>
    %4 = vector.broadcast %3 : vector<1x32xf32> to vector<8x32xf32>
    %5 = arith.addf %2, %4 : vector<8x32xf32>
    %cst_5 = arith.constant dense<0.000000e+00> : vector<32xf32>
    %6 = vector.multi_reduction <add>, %5, %cst_5 [0] : vector<8x32xf32> to vector<32xf32>
    %7 = vector.shape_cast %6 : vector<32xf32> to vector<1x32xf32>
    %cst_6 = arith.constant 1.250000e-01 : f32
    %8 = vector.broadcast %cst_6 : f32 to vector<1x32xf32>
    %9 = arith.mulf %7, %8 : vector<1x32xf32>
    %10 = vector.broadcast %9 : vector<1x32xf32> to vector<8x32xf32>
    %11 = arith.subf %5, %10 : vector<8x32xf32>
    %12 = arith.mulf %11, %11 : vector<8x32xf32>
    %cst_7 = arith.constant dense<0.000000e+00> : vector<32xf32>
    %13 = vector.multi_reduction <add>, %12, %cst_7 [0] : vector<8x32xf32> to vector<32xf32>
    %14 = vector.shape_cast %13 : vector<32xf32> to vector<1x32xf32>
    %cst_8 = arith.constant 1.250000e-01 : f32
    %15 = vector.broadcast %cst_8 : f32 to vector<1x32xf32>
    %16 = arith.mulf %14, %15 : vector<1x32xf32>
    %cst_9 = arith.constant 0.000000e+00 : f32
    %17 = vector.broadcast %cst_9 : f32 to vector<1x32xf32>
    %18 = arith.maximumf %16, %17 : vector<1x32xf32>
    %cst_10 = arith.constant 9.99999974E-6 : f32
    %19 = vector.broadcast %cst_10 : f32 to vector<1x32xf32>
    %20 = arith.addf %18, %19 : vector<1x32xf32>
    %21 = math.rsqrt %20 : vector<1x32xf32>
    %c1 = arith.constant 1 : index
    %c0_11 = arith.constant 0 : index
    %22 = vector.load %arg2[%c1, %c0_11] : memref<3x32xf32, #tpu.memory_space<vmem>>, vector<1x32xf32>
    %23 = arith.mulf %22, %21 : vector<1x32xf32>
    %c2 = arith.constant 2 : index
    %c0_12 = arith.constant 0 : index
    %24 = vector.load %arg2[%c2, %c0_12] : memref<3x32xf32, #tpu.memory_space<vmem>>, vector<1x32xf32>
    %25 = vector.broadcast %23 : vector<1x32xf32> to vector<8x32xf32>
    %26 = arith.mulf %11, %25 : vector<8x32xf32>
    %27 = vector.broadcast %24 : vector<1x32xf32> to vector<8x32xf32>
    %28 = arith.addf %26, %27 : vector<8x32xf32>
    %c0_13 = arith.constant 0 : index
    %c0_14 = arith.constant 0 : index
    %29 = vector.load %arg3[%c0_13, %c0_14] : memref<8x32xf32, #tpu.memory_space<vmem>>, vector<8x32xf32>
    tpu.vector_store %arg3[%c0_13, %c0_14], %28 {strides = array<i32>} : memref<8x32xf32, #tpu.memory_space<vmem>>, vector<8x32xf32>,
    return
  }
}

</mosaic_0001>

<bundles_post_ra>
// kernel: tpu_custom_call.1
= control target key start
LH: loop header
LB: loop body
LE: loop exit
PB: predicated region body
PF: predicated region fallthrough
CT: control target
= control target key end

     0   :  { %8 = vsyncpa [#allocation3], 0  ;;  %s298_s0 = inlined_call_operand.hbm [shape: f32[8,16], index: 0, kind: input, shape index: {}]   ;;  %s299_s1 = inlined_call_operand.hbm [shape: f32[16,32], index: 1, kind: input, shape index: {}]   ;;  %s300_s2 = inlined_call_operand.hbm [shape: f32[3,32], index: 2, kind: input, shape index: {}]   ;;  %s301_s3 = inlined_call_operand.hbm [shape: f32[8,32], index: 3, kind: output, shape index: {}]  }
   0x1   :  { %9 = vsyncpa [#allocation6], 0  ;;  %s26_s14 = sshll.u32 %s299_s1, 4  ;;  %s27_s14 = int_to_ptr.hbm [resolvable:$true] %s26_s14 }
   0x2   :  { %10 = vsyncpa [#allocation4], 0  ;;  %s257_s15 = smov [#allocation5]   ;;  %s16_s19 = sshll.u32 %s298_s0, 4  ;;  %s17_s19 = int_to_ptr.hbm [resolvable:$true] %s16_s19 }
   0x3   :  { %s28_s16 = sshll.u32 %s257_s15, 4  ;;  %s258_s20 = smov 128   ;;  %s29_s16 = int_to_ptr.vmem [resolvable:$true] %s28_s16 }
   0x4   :  { %s259_s21 = smov 8   ;;  %s260_s22 = smov [#allocation2]  }
   0x5   :  { %34 = dma.hbm_to_vmem [thread:$0]  %s27_s14, 256, %s29_s16, [#allocation6], %s258_s20, %s258_s20, %s259_s21  }
   0x6   :  { %s18_s23 = sshll.u32 %s260_s22, 4  ;;  %s40_s26 = sshll.u32 %s300_s2, 4  ;;  %s19_s23 = int_to_ptr.vmem [resolvable:$true] %s18_s23  ;;  %s41_s26 = int_to_ptr.hbm [resolvable:$true] %s40_s26 }
   0x7   :  { %21 = dma.hbm_to_vmem [thread:$0]  %s17_s19, 128, %s19_s23, [#allocation3]  }
   0x8   :  { %s261_s1 = smov [#allocation7]  }
   0x9   :  { %s42_s27 = sshll.u32 %s261_s1, 4  ;;  %s43_s27 = int_to_ptr.vmem [resolvable:$true] %s42_s27 }
   0xa   :  { %45 = dma.hbm_to_vmem [thread:$0]  %s41_s26, 64, %s43_s27, [#allocation6]  }
   0xb   :  { %251 = dma.done.wait [#allocation3], 128  }
   0xc   :  { %252 = vsyncadd [#allocation3], 4294967168 }
   0xd   :  { %253 = dma.done.wait [#allocation6], 320  }
   0xe   :  { %254 = vsyncadd [#allocation6], 4294966976  ;;  %v60_v0 = vld [vmem:[#allocation5 + $0x8] sm:$0xff]  ;;  %v59_v1 = vld [vmem:[#allocation5] sm:$0xff]  ;;  %vm63_vm0 = vcmask 130048   ;;  %vm87_vm1 = vcmask 261120  }
   0xf   :  { %81 = vmatpush.msra.mxu0 %v60_v0  ;;  %v58_v2 = vld [vmem:[#allocation2] sm:$0xff]  ;;  %v151_v3 = vld [vmem:[#allocation7] ss:$0 sm:$0xff]  ;;  %v118_v32 = vld [vmem:[#allocation7 + $0x1] sm:$0x1]  ;;  %s262_s0 = smov [#allocation8]  }
  0x10   :  { %v152_v36 = vld [vmem:[#allocation7 + $0x2] ss:$0 sm:$0xff]  ;;  %s131_s2 = sshll.u32 %s262_s0, 4  ;;  %s133_s30 = sshll.u32 %s301_s3, 4  ;;  %s132_s2 = int_to_ptr.vmem [resolvable:$true] %s131_s2  ;;  %s134_s30 = int_to_ptr.hbm [resolvable:$true] %s133_s30 }
  0x11   :  { %82 = vmatpush.msra.mxu0 %v59_v1 }
  0x12   :  { %144 = vmatmul.msk.f32.vlgmr.msra.gmra.mxu0 %vm63_vm0, %v58_v2 }
  0x8f   :  { %v84_v4 = vpop.f32.mrf.mxu0 }
  0x90   :  { %v85_v5 = vadd.f32 %v151_v3, %v84_v4 }
  0x92   :  { %v88_v6 = vsel %vm87_vm1, %v85_v5, 0.0 }
  0x93   :  { %v89_v7 = vrot.slane %v88_v6, 4 }
  0x95   :  { %v90_v8 = vadd.f32 %v89_v7, %v88_v6 }
  0x97   :  { %v91_v9 = vrot.slane %v90_v8, 2 }
  0x99   :  { %v92_v10 = vadd.f32 %v91_v9, %v90_v8 }
  0x9b   :  { %v93_v11 = vrot.slane %v92_v10, 1 }
  0x9d   :  { %v94_v12 = vadd.f32 %v93_v11, %v92_v10 }
  0x9f   :  { %v95_v13 = vmul.f32 0.125, %v94_v12 }
  0xa1   :  { %v96_v14 = vsub.f32 %v85_v5, %v95_v13 }
  0xa3   :  { %v97_v15 = vmul.f32 %v96_v14, %v96_v14 }
  0xa5   :  { %v98_v16 = vsel %vm87_vm1, %v97_v15, 0.0 }
  0xa6   :  { %v99_v17 = vrot.slane %v98_v16, 4 }
  0xa8   :  { %v100_v18 = vadd.f32 %v99_v17, %v98_v16 }
  0xaa   :  { %v101_v19 = vrot.slane %v100_v18, 2 }
  0xac   :  { %v102_v20 = vadd.f32 %v101_v19, %v100_v18 }
  0xae   :  { %v103_v21 = vrot.slane %v102_v20, 1 }
  0xb0   :  { %v104_v22 = vadd.f32 %v103_v21, %v102_v20 }
  0xb2   :  { %v105_v23 = vmul.f32 0.125, %v104_v22 }
  0xb4   :  { %v106_v24 = vmax.f32 %v105_v23, 0.0 }
  0xb6   :  { %v107_v25 = vadd.f32 1e-05, %v106_v24 }
  0xb8   :  { %153 = vrsqrt.f32 %v107_v25  ;;  %vm114_vm3 = vweird.f32 %v107_v25 }
  0xbe   :  { %v154_v26 = vpop.eup %153 }
  0xbf   :  { %v109_v27 = vmul.f32 %v154_v26, %v107_v25  ;;  %vm115_vm2 = vweird.f32 %v154_v26 }
  0xc0   :  { %vm116_vm4 = vmor %vm114_vm3, %vm115_vm2 }
  0xc1   :  { %v110_v28 = vmul.f32 %v154_v26, %v109_v27 }
  0xc3   :  { %v111_v29 = vmul.f32 0.5, %v110_v28 }
  0xc5   :  { %v112_v30 = vsub.f32 1.5, %v111_v29 }
  0xc7   :  { %v113_v31 = vmul.f32 %v154_v26, %v112_v30 }
  0xc9   :  { %v117_v33 = vsel %vm116_vm4, %v154_v26, %v113_v31 }
  0xca   :  { %v119_v34 = vmul.f32 %v118_v32, %v117_v33 }
  0xcc   :  { %v121_v35 = vperm.slane %v119_v34, 0 }
  0xce   :  { %v122_v37 = vmul.f32 %v121_v35, %v96_v14 }
  0xd0   :  { %v124_v38 = vadd.f32 %v152_v36, %v122_v37 }
  0xd2   :  { %125 = vst.msk [vmem:[#allocation8] sm:$0xff] %vm87_vm1, %v124_v38 }
  0xd3   :  { %136 = dma.vmem_to_hbm [thread:$0]  %s132_s2, 128, %s134_s30, [#allocation4]  }
  0xd4   :  { %255 = dma.done.wait [#allocation4], 128  }
  0xd5   :  { %256 = vsyncadd [#allocation4], 4294967168 }
  0xd6   :  { %141 = vsyncpa [#allocation3], 1 }
  0xd7   :  { %142 = vsyncpa [#allocation6], 1 }
  0xd8   :  { %143 = vsyncpa [#allocation4], 1 }

</bundles_post_ra>
